<compile_context>
chip_gen: v5e
topology: v5e:2x2
jax: 0.10.0
libtpu: 0.0.40
codegen_flags: <defaults>
</compile_context>

<pallas_src>
import math
from typing import NamedTuple, Optional

import jax
import jax.numpy as jnp
from jax.experimental import pallas as pl
from jax.experimental.pallas import tpu as pltpu


def _round_up(x, m):
    return ((x + m - 1) // m) * m


def _chip_profile():
    """Best-effort TPU generation query (Python/launch time, never traced)."""
    kind = ""
    try:
        kind = jax.devices()[0].device_kind.lower()
    except Exception:
        pass
    is_v7 = "v7" in kind
    is_v5e = ("v5 lite" in kind) or ("v5e" in kind) or ("v5litepod" in kind)
    num_tc = 2 if is_v7 else 1
    # v7x has only 64 MiB physical VMEM per TensorCore -> leave headroom;
    # v5e/v6e have 128 MiB. Unknown backend -> conservative 48 MiB.
    vmem_cap = (48 << 20) if (is_v7 or not kind) else (96 << 20)
    # v6e/v7x MXU is 2x256^2 -> prefer 256-multiple N tiles; v5e is 4x128^2.
    n_pref = 128 if is_v5e else 256
    return num_tc, vmem_cap, n_pref


def _pick_tile(dim, cap, align, step, pref_mult):
    """Pick a tile size <= cap that minimizes padding waste.

    If the whole (align-rounded) dim fits under the cap, use it as a single
    tile. Otherwise scan candidates (multiples of `step`) minimizing
    round_up(dim, t) - dim, tie-breaking toward `pref_mult` multiples (MXU
    width) and then larger tiles.
    """
    dim_r = _round_up(dim, align)
    if dim_r <= cap:
        return dim_r
    best_key, best_t = None, step
    t = max((cap // step) * step, step)
    while t >= step:
        pad = _round_up(dim, t) - dim
        key = (pad, 0 if t % pref_mult == 0 else 1, -t)
        if best_key is None or key < best_key:
            best_key, best_t = key, t
        t -= step
    return best_t


# --------------------------------------------------------------------------
# Kernels
# --------------------------------------------------------------------------

def _linear_kernel_k1(x_ref, w_ref, b_ref, o_ref):
    """Single-K-step fast path: no accumulator scratch, no init/finalize copy."""
    acc = jnp.dot(x_ref[...], w_ref[...], preferred_element_type=jnp.float32)
    o_ref[...] = (acc + b_ref[...]).astype(o_ref.dtype)


def _linear_kernel_k1_nobias(x_ref, w_ref, o_ref):
    o_ref[...] = jnp.dot(
        x_ref[...], w_ref[...], preferred_element_type=jnp.float32
    ).astype(o_ref.dtype)


def _linear_kernel_acc(x_ref, w_ref, b_ref, o_ref, acc_ref):
    """Multi-K-step path: f32 VMEM accumulator, bias added once at finalize."""
    k = pl.program_id(2)

    @pl.when(k == 0)
    def _():
        acc_ref[...] = jnp.zeros_like(acc_ref)

    acc_ref[...] += jnp.dot(
        x_ref[...], w_ref[...], preferred_element_type=jnp.float32
    )

    @pl.when(k == pl.num_programs(2) - 1)
    def _():
        o_ref[...] = (acc_ref[...] + b_ref[...]).astype(o_ref.dtype)


def _linear_kernel_acc_nobias(x_ref, w_ref, o_ref, acc_ref):
    k = pl.program_id(2)

    @pl.when(k == 0)
    def _():
        acc_ref[...] = jnp.zeros_like(acc_ref)

    acc_ref[...] += jnp.dot(
        x_ref[...], w_ref[...], preferred_element_type=jnp.float32
    )

    @pl.when(k == pl.num_programs(2) - 1)
    def _():
        o_ref[...] = acc_ref[...].astype(o_ref.dtype)


# --------------------------------------------------------------------------
# Host-side wrappers
# --------------------------------------------------------------------------

class PreparedLinear(NamedTuple):
    """Weight/bias pre-converted to kernel layout (do this ONCE at init)."""
    wt: jax.Array                  # (Kp, Np) = weight.T padded, compute dtype
    bias: Optional[jax.Array]      # (1, Np) float32, padded; or None
    in_features: int
    out_features: int
    tn: int
    tk: int


def prepare_linear(weight, bias=None, *, compute_dtype=jnp.bfloat16,
                   tn_max=512, tk_max=1024) -> PreparedLinear:
    """Transpose/pad/cast the weight to kernel layout exactly once.

    weight: (out_features, in_features) torch layout. The kernel consumes
    (Kp, Np) so the matmul is a plain x @ w with Out lane-dense.
    """
    Out, In = weight.shape
    _, _, n_pref = _chip_profile()
    tn = _pick_tile(Out, tn_max, 128, 128, n_pref)
    tk = _pick_tile(In, tk_max, 128, 128, 512)
    Np = _round_up(Out, tn)
    Kp = _round_up(In, tk)

    wt = weight.T.astype(compute_dtype)
    if (Kp, Np) != (In, Out):
        wt = jnp.pad(wt, ((0, Kp - In), (0, Np - Out)))

    b_p = None
    if bias is not None:
        b_p = bias.astype(jnp.float32)
        if Np != Out:
            b_p = jnp.pad(b_p, (0, Np - Out))
        b_p = b_p.reshape(1, Np)

    return PreparedLinear(wt, b_p, In, Out, tn, tk)


def my_linear_prepared(x, params: PreparedLinear, *, tm_max=512):
    """Hot path: output = x @ weight.T (+ bias) with pre-prepared weights."""
    B, In = x.shape
    assert In == params.in_features, (
        f"Wrong Input Features. Please use tensor with "
        f"{params.in_features} Input Features"
    )
    Out = params.out_features
    compute_dtype = params.wt.dtype
    out_dtype = x.dtype
    has_bias = params.bias is not None

    num_tc, vmem_cap, _ = _chip_profile()

    tn, tk = params.tn, params.tk
    Kp, Np = params.wt.shape
    tm = _pick_tile(B, tm_max, 8, 64, 256)
    Mp = _round_up(B, tm)

    # v7x megacore coverage: make sure at least one "parallel" grid axis has
    # extent >= 2 so both TensorCores get work.  (Np/Mp stay multiples of the
    # halved tile, so no re-padding is needed.)
    if num_tc >= 2 and Mp // tm == 1 and Np // tn == 1:
        if tn % 256 == 0:
            tn //= 2
        elif tm % 16 == 0:
            tm //= 2

    Mb, Nb, Kb = Mp // tm, Np // tn, Kp // tk

    # Activation cast + pad (zeros in K contribute 0; padded M rows sliced off).
    x_p = x.astype(compute_dtype)
    if (Mp, Kp) != (B, In):
        x_p = jnp.pad(x_p, ((0, Mp - B), (0, Kp - In)))

    # VMEM budget: double-buffered input/output tiles + f32 accumulator.
    in_item = jnp.dtype(compute_dtype).itemsize
    out_item = jnp.dtype(out_dtype).itemsize
    vmem_needed = (
        2 * in_item * (tm * tk + tk * tn)        # double-buffered x / w tiles
        + 2 * out_item * tm * tn                 # double-buffered out tile
        + (0 if Kb == 1 else 4 * tm * tn)        # f32 accumulator scratch
        + (2 * 4 * tn if has_bias else 0)        # bias tile
    )
    vmem_limit = int(min(max(2 * vmem_needed, 32 << 20), vmem_cap))

    # Advisory cost: includes the re-streaming factor (x read Nb times, w read
    # Mb times).
    cost = pl.CostEstimate(
        flops=2 * Mp * Kp * Np,
        transcendentals=0,
        bytes_accessed=(
            in_item * (Nb * Mp * Kp + Mb * Kp * Np)
            + out_item * Mp * Np
            + (4 * Np if has_bias else 0)
        ),
    )

    if Kb == 1:
        # K fits one tile: no accumulator scratch, all axes parallel.
        grid = (Mb, Nb)
        x_spec = pl.BlockSpec((tm, tk), lambda i, j: (i, 0))
        w_spec = pl.BlockSpec((tk, tn), lambda i, j: (0, j))
        o_spec = pl.BlockSpec((tm, tn), lambda i, j: (i, j))
        b_spec = pl.BlockSpec((1, tn), lambda i, j: (0, j))
        scratch = []
        kern = _linear_kernel_k1 if has_bias else _linear_kernel_k1_nobias
        sem = ("parallel", "parallel")
    else:
        grid = (Mb, Nb, Kb)
        x_spec = pl.BlockSpec((tm, tk), lambda i, j, k: (i, k))
        w_spec = pl.BlockSpec((tk, tn), lambda i, j, k: (k, j))
        o_spec = pl.BlockSpec((tm, tn), lambda i, j, k: (i, j))
        b_spec = pl.BlockSpec((1, tn), lambda i, j, k: (0, j))
        scratch = [pltpu.VMEM((tm, tn), jnp.float32)]
        kern = _linear_kernel_acc if has_bias else _linear_kernel_acc_nobias
        sem = ("parallel", "parallel", "arbitrary")

    in_specs = [x_spec, w_spec] + ([b_spec] if has_bias else [])
    operands = (x_p, params.wt) + ((params.bias,) if has_bias else ())

    out_p = pl.pallas_call(
        kern,
        out_shape=jax.ShapeDtypeStruct((Mp, Np), out_dtype),
        grid_spec=pltpu.PrefetchScalarGridSpec(
            num_scalar_prefetch=0,
            grid=grid,
            in_specs=in_specs,
            out_specs=o_spec,
            scratch_shapes=scratch,
        ),
        compiler_params=pltpu.CompilerParams(
            dimension_semantics=sem,
            vmem_limit_bytes=vmem_limit,
        ),
        cost_estimate=cost,
    )(*operands)

    if (Mp, Np) != (B, Out):
        out_p = out_p[:B, :Out]
    return out_p


def my_linear(x, weight, bias=None, *, compute_dtype=jnp.bfloat16,
              tm_max=512, tn_max=512, tk_max=1024):
    """Convenience wrapper (prepares the weight per call).

    For repeated use (the real LSTM case), call prepare_linear() once and use
    my_linear_prepared() so the weight transpose/pad/cast HBM passes are not
    paid on every forward.
    """
    prep = prepare_linear(weight, bias, compute_dtype=compute_dtype,
                          tn_max=tn_max, tk_max=tk_max)
    return my_linear_prepared(x, prep, tm_max=tm_max)


def init_params(key, in_features, out_features, dtype=jnp.float32):
    """Deterministic init mirroring torch kaiming_uniform_(a=sqrt(5)) + bias bound."""
    kw, kb = jax.random.split(key)
    fan_in = in_features
    w_bound = math.sqrt(6.0 / ((1.0 + 5.0) * fan_in))   # = sqrt(1/fan_in)
    weight = jax.random.uniform(
        kw, (out_features, in_features), dtype, minval=-w_bound, maxval=w_bound
    )
    b_bound = 1.0 / math.sqrt(fan_in)
    bias = jax.random.uniform(
        kb, (out_features,), dtype, minval=-b_bound, maxval=b_bound
    )
    return weight, bias


if __name__ == "__main__":
    key = jax.random.PRNGKey(0)
    k_x, k_p, k_x2, k_p2 = jax.random.split(key, 4)
    HI = jax.lax.Precision.HIGHEST

    # --- Case 1: the module's toy shapes; default bf16 compute / f32 acc ----
    batch, in_features, out_features = 8, 32, 64
    x = jax.random.normal(k_x, (batch, in_features), dtype=jnp.float32)
    weight, bias = init_params(k_p, in_features, out_features)

    prep = prepare_linear(weight, bias)                 # weight prepared ONCE
    out = jax.block_until_ready(my_linear_prepared(x, prep))
    assert out.shape == (batch, out_features)
    assert out.dtype == jnp.float32

    ref_f32 = jnp.dot(x, weight.T, precision=HI) + bias
    xq = x.astype(jnp.bfloat16).astype(jnp.float32)
    wq = weight.astype(jnp.bfloat16).astype(jnp.float32)
    ref_q = jnp.dot(xq, wq.T, precision=HI) + bias
    assert jnp.allclose(out, ref_q, atol=2e-3, rtol=2e-3), "mismatch (bf16 bias)"
    assert jnp.allclose(out, ref_f32, atol=5e-2, rtol=5e-2), "mismatch vs f32 ref"

    # f32 compute path (tight vs torch semantics)
    prep32 = prepare_linear(weight, bias, compute_dtype=jnp.float32)
    out32 = jax.block_until_ready(my_linear_prepared(x, prep32))
    assert jnp.allclose(out32, ref_f32, atol=1e-4, rtol=1e-4), "mismatch (f32)"

    # no-bias path (dedicated kernel, no zero-array DMA)
    prep_nb = prepare_linear(weight, None, compute_dtype=jnp.float32)
    out_nb = jax.block_until_ready(my_linear_prepared(x, prep_nb))
    assert jnp.allclose(out_nb, jnp.dot(x, weight.T, precision=HI),
                        atol=1e-4, rtol=1e-4), "mismatch (no-bias)"

    # --- Case 2: multi-tile grid in all of M, N, K (exercises accumulator,
    #     bias-added-once finalize, and padded-row slice-off) ---------------
    B2, In2, Out2 = 160, 640, 384
    x2 = jax.random.normal(k_x2, (B2, In2), dtype=jnp.float32)
    weight2, bias2 = init_params(k_p2, In2, Out2)
    prep2 = prepare_linear(weight2, bias2, tn_max=128, tk_max=128)
    out2 = jax.block_until_ready(my_linear_prepared(x2, prep2, tm_max=64))
    assert out2.shape == (B2, Out2)
    x2q = x2.astype(jnp.bfloat16).astype(jnp.float32)
    w2q = weight2.astype(jnp.bfloat16).astype(jnp.float32)
    ref2_q = jnp.dot(x2q, w2q.T, precision=HI) + bias2
    assert jnp.allclose(out2, ref2_q, atol=5e-3, rtol=5e-3), "mismatch (tiled)"

    # Convenience wrapper (per-call weight prep) still works.
    out_conv = jax.block_until_ready(my_linear(x, weight, bias))
    assert jnp.allclose(out_conv, ref_q, atol=2e-3, rtol=2e-3), "mismatch (wrapper)"

    print("KERNEL_OK")
</pallas_src>

<mosaic_0001>
module attributes {stable_mosaic.version = 11 : i64} {
  func.func @_linear_kernel_k1(%arg0: i32, %arg1: i32, %arg2: memref<8x128xbf16, #tpu.memory_space<vmem>>, %arg3: memref<128x128xbf16, #tpu.memory_space<vmem>>, %arg4: memref<1x128xf32, #tpu.memory_space<vmem>>, %arg5: memref<8x128xf32, #tpu.memory_space<vmem>>) attributes {dimension_semantics = [#tpu.dimension_semantics<parallel>, #tpu.dimension_semantics<parallel>], iteration_bounds = array<i64: 1, 1>, scalar_prefetch = 0 : i64, scratch_operands = 0 : i64, tpu.core_type = #tpu.core_type<tc>, window_params = [{transform_indices = @transform_0, window_bounds = array<i64: 8, 128>}, {transform_indices = @transform_1, window_bounds = array<i64: 128, 128>}, {transform_indices = @transform_2, window_bounds = array<i64: 1, 128>}, {transform_indices = @transform_3, window_bounds = array<i64: 8, 128>}]} {
    %c0 = arith.constant 0 : index
    %c0_0 = arith.constant 0 : index
    %0 = vector.load %arg2[%c0, %c0_0] : memref<8x128xbf16, #tpu.memory_space<vmem>>, vector<8x128xbf16>
    %c0_1 = arith.constant 0 : index
    %c0_2 = arith.constant 0 : index
    %1 = vector.load %arg3[%c0_1, %c0_2] : memref<128x128xbf16, #tpu.memory_space<vmem>>, vector<128x128xbf16>
    %cst = arith.constant dense<0.000000e+00> : vector<8x128xf32>
    %2 = tpu.matmul %0, %1, %cst {dimension_numbers = #tpu.dot_dimension_numbers<[1], [0], [0], [1], [0, 0, 1, 1], [], []>} : vector<8x128xbf16>, vector<128x128xbf16>, vector<8x128xf32> -> vector<8x128xf32>
    %c0_3 = arith.constant 0 : index
    %c0_4 = arith.constant 0 : index
    %3 = vector.load %arg4[%c0_3, %c0_4] : memref<1x128xf32, #tpu.memory_space<vmem>>, vector<1x128xf32>
    %4 = vector.broadcast %3 : vector<1x128xf32> to vector<8x128xf32>
    %5 = arith.addf %2, %4 : vector<8x128xf32>
    %c0_5 = arith.constant 0 : index
    %c0_6 = arith.constant 0 : index
    %6 = vector.load %arg5[%c0_5, %c0_6] : memref<8x128xf32, #tpu.memory_space<vmem>>, vector<8x128xf32>
    tpu.vector_store %arg5[%c0_5, %c0_6], %5 {strides = array<i32>} : memref<8x128xf32, #tpu.memory_space<vmem>>, vector<8x128xf32>,
    return
  }
  func.func @transform_0(%arg0: i32, %arg1: i32) -> (i32, i32) {
    %c0_i32 = arith.constant 0 : i32
    %c0_i32_0 = arith.constant 0 : i32
    return %arg0, %c0_i32 : i32, i32
  }
  func.func @transform_1(%arg0: i32, %arg1: i32) -> (i32, i32) {
    %c0_i32 = arith.constant 0 : i32
    %c0_i32_0 = arith.constant 0 : i32
    return %c0_i32, %arg1 : i32, i32
  }
  func.func @transform_2(%arg0: i32, %arg1: i32) -> (i32, i32) {
    %c0_i32 = arith.constant 0 : i32
    %c0_i32_0 = arith.constant 0 : i32
    return %c0_i32, %arg1 : i32, i32
  }
  func.func @transform_3(%arg0: i32, %arg1: i32) -> (i32, i32) {
    %c0_i32 = arith.constant 0 : i32
    return %arg0, %arg1 : i32, i32
  }
}

</mosaic_0001>

<bundles_post_ra>
// kernel: tpu_custom_call.1
= control target key start
LH: loop header
LB: loop body
LE: loop exit
PB: predicated region body
PF: predicated region fallthrough
CT: control target
= control target key end

     0   :  { %8 = vsyncpa [#allocation3], 0  ;;  %s307_s0 = inlined_call_operand.hbm [shape: bf16[8,128], index: 0, kind: input, shape index: {}]   ;;  %s308_s1 = inlined_call_operand.hbm [shape: bf16[128,128], index: 1, kind: input, shape index: {}]   ;;  %s309_s2 = inlined_call_operand.vmem [shape: f32[1,128], index: 2, kind: input, shape index: {}]   ;;  %s310_s3 = inlined_call_operand.hbm [shape: f32[8,128], index: 3, kind: output, shape index: {}]  }
   0x1   :  { %9 = vsyncpa [#allocation6], 0 }
   0x2   :  { %10 = vsyncpa [#allocation4], 0  ;;  %s16_s14 = sshll.u32 %s307_s0, 4  ;;  %s270_s15 = smov [#allocation2]   ;;  %s17_s14 = int_to_ptr.hbm [resolvable:$true] %s16_s14 }
   0x3   :  { %s18_s16 = sshll.u32 %s270_s15, 4  ;;  %s26_s19 = sshll.u32 %s308_s1, 4  ;;  %s19_s16 = int_to_ptr.vmem [resolvable:$true] %s18_s16  ;;  %s27_s19 = int_to_ptr.hbm [resolvable:$true] %s26_s19 }
   0x4   :  { %21 = dma.hbm_to_vmem [thread:$0]  %s17_s14, 64, %s19_s16, [#allocation3]  }
   0x5   :  { %s271_s20 = smov [#allocation5]   ;;  %s272_s22 = smov 64  }
   0x6   :  { %s28_s21 = sshll.u32 %s271_s20, 4  ;;  %s273_s23 = smov 4   ;;  %s29_s21 = int_to_ptr.vmem [resolvable:$true] %s28_s21 }
   0x7   :  { %34 = dma.hbm_to_vmem [thread:$0]  %s27_s19, 1024, %s29_s21, [#allocation6], %s272_s22, %s272_s22, %s273_s23  }
   0x8   :  { %264 = dma.done.wait [#allocation3], 64  }
   0x9   :  { %265 = vsyncadd [#allocation3], 4294967232 }
   0xa   :  { %266 = dma.done.wait [#allocation6], 1024  }
   0xb   :  { %267 = vsyncadd [#allocation6], 4294966272  ;;  %v185_v0 = vld [vmem:[#allocation5 + $0x38] sm:$0xff]  ;;  %v184_v1 = vld [vmem:[#allocation5 + $0x30] sm:$0xff]  ;;  %s274_s24 = smov [#allocation7]   ;;  %s135_s28 = sshll.u32 %s310_s3, 4  ;;  %s136_s28 = int_to_ptr.hbm [resolvable:$true] %s135_s28 }
   0xc   :  { %114 = vmatpush.bf16.msra.mxu0 %v185_v0  ;;  %v183_v2 = vld [vmem:[#allocation5 + $0x28] sm:$0xff]  ;;  %v182_v3 = vld [vmem:[#allocation5 + $0x20] sm:$0xff]  ;;  %v181_v4 = vld [vmem:[#allocation5 + $0x18] sm:$0xff]  ;;  %s133_s25 = sshll.u32 %s274_s24, 4  ;;  %s134_s25 = int_to_ptr.vmem [resolvable:$true] %s133_s25 }
   0xd   :  { %v180_v5 = vld [vmem:[#allocation5 + $0x10] sm:$0xff]  ;;  %v179_v6 = vld [vmem:[#allocation5 + $0x8] sm:$0xff]  ;;  %v178_v7 = vld [vmem:[#allocation5] sm:$0xff] }
   0xe   :  { %v45_v8 = vld [vmem:[#allocation2] sm:$0xf] }
   0xf   :  { %v191_v9 = vld [vmem:[%s309_s2] ss:$0 sm:$0xff] }
  0x10   :  { %115 = vmatpush.bf16.msra.mxu0 %v184_v1 }
  0x14   :  { %116 = vmatpush.bf16.msra.mxu0 %v183_v2 }
  0x18   :  { %117 = vmatpush.bf16.msra.mxu0 %v182_v3 }
  0x1c   :  { %118 = vmatpush.bf16.msra.mxu0 %v181_v4 }
  0x20   :  { %119 = vmatpush.bf16.msra.mxu0 %v180_v5 }
  0x24   :  { %120 = vmatpush.bf16.msra.mxu0 %v179_v6 }
  0x28   :  { %121 = vmatpush.bf16.msra.mxu0 %v178_v7 }
  0x2b   :  { %122 = vmatmul.bf16.vlgmr.msra.gmra.mxu0 %v45_v8 }
  0xa8   :  { %v123_v10 = vpop.f32.mrf.mxu0 }
  0xa9   :  { %v124_v11 = vadd.f32 %v191_v9, %v123_v10 }
  0xab   :  { %127 = vst [vmem:[#allocation7] sm:$0xff] %v124_v11 }
  0xac   :  { %138 = dma.vmem_to_hbm [thread:$0]  %s134_s25, 128, %s136_s28, [#allocation4]  }
  0xb0   :  { %v125_v12 = vpop.f32.mrf.mxu0 }
  0xb1   :  { %268 = dma.done.wait [#allocation4], 128  }
  0xb2   :  { %269 = vsyncadd [#allocation4], 4294967168 }
  0xb3   :  { %143 = vsyncpa [#allocation3], 1 }
  0xb4   :  { %144 = vsyncpa [#allocation6], 1 }
  0xb5   :  { %145 = vsyncpa [#allocation4], 1 }

</bundles_post_ra>
